<compile_context>
chip_gen: v7x
topology: tpu7x:2x2x1
jax: 0.10.0
libtpu: 0.0.40
codegen_flags: <defaults>
</compile_context>

<pallas_src>
import functools

import jax
import jax.numpy as jnp
from jax import lax
from jax.experimental import pallas as pl
from jax.experimental.pallas import tpu as pltpu


# ---------------- Pass 1: merged projection (proj + skip) ----------------
def _proj_kernel(x_ref, wcat_ref, proj_ref, skip_ref, *, F_pad):
    # y[:, :F_pad] = head-mean-folded linear_proj, y[:, F_pad:] = skip_proj.
    y = jnp.dot(x_ref[...], wcat_ref[...],
                preferred_element_type=jnp.float32)       # (TM, 2*F_pad) f32
    proj_ref[...] = y[:, :F_pad].astype(jnp.bfloat16)     # bf16 for MXU scatter
    skip_ref[...] = y[:, F_pad:]                          # f32, added once/node


# ---------------- Pass 2: scatter-add aggregation + skip + bias ----------------
def _agg_kernel(proj_ref, trg_ref, skip_ref, bias_ref, out_ref, acc_ref, *, tile):
    i = pl.program_id(0)                      # row (output node) tile
    k = pl.program_id(1)                      # edge tile (reduction axis)

    # Seed the accumulator with this row tile's skip projection.
    @pl.when(k == 0)
    def _():
        acc_ref[...] = skip_ref[...]

    # Per-tile one-hot scatter matrix: sel[m, e] = 1 iff edge e targets
    # node (i*tile + m).  Exactly representable in bf16.
    trg = trg_ref[...]                                            # (1, TE) int32
    row_ids = i * tile + lax.broadcasted_iota(jnp.int32, (tile, tile), 0)
    sel = (row_ids == jnp.broadcast_to(trg, (tile, tile))).astype(jnp.bfloat16)

    # scatter-add over targets as a bf16 MXU matmul with f32 accumulation.
    acc_ref[...] += jnp.dot(sel, proj_ref[...],
                            preferred_element_type=jnp.float32)

    @pl.when(k == pl.num_programs(1) - 1)
    def _():
        out_ref[...] = acc_ref[...] + bias_ref[...]


def gat_forward(x, edge_index, wp_t, ws_t, bias, *,
                num_heads, num_out_features, tile=128):
    """x:(N,F_in), edge_index:(2,E) int, wp_t/ws_t:(F_in,H*F_out), bias:(F_out,)."""
    N, F_in = x.shape
    E = edge_index.shape[1]
    assert E == N, "NAT GATLayerImp3 (no lift) requires E == num_of_nodes"
    H, F_out = num_heads, num_out_features
    assert wp_t.shape == (F_in, H * F_out) and ws_t.shape == (F_in, H * F_out)
    assert tile % 128 == 0

    # ---- Fold the head-mean (concat=False) into the weights (exact) ----
    wp_mean = wp_t.astype(jnp.float32).reshape(F_in, H, F_out).mean(axis=1)
    ws_mean = ws_t.astype(jnp.float32).reshape(F_in, H, F_out).mean(axis=1)

    # ---- Lane-dense output: pad F_out up to a multiple of 128 ----
    F_pad = pl.cdiv(F_out, 128) * 128
    wp_pad = jnp.zeros((F_in, F_pad), jnp.float32).at[:, :F_out].set(wp_mean)
    ws_pad = jnp.zeros((F_in, F_pad), jnp.float32).at[:, :F_out].set(ws_mean)
    w_cat = jnp.concatenate([wp_pad, ws_pad], axis=1)          # (F_in, 2*F_pad)
    bias_pad = jnp.zeros((1, F_pad), jnp.float32).at[0, :F_out].set(
        bias.astype(jnp.float32))

    # ---- Pad N (== E) to a tile multiple; padded rows/edges contribute 0 ----
    N_pad = pl.cdiv(N, tile) * tile
    x_p = jnp.zeros((N_pad, F_in), jnp.float32).at[:N].set(x.astype(jnp.float32))
    trg = jnp.zeros((1, N_pad), jnp.int32).at[0, :E].set(
        edge_index[1].astype(jnp.int32))

    n_tiles = N_pad // tile

    # ---------------- Pass 1: projection (done once per node tile) ----------------
    proj_bf16, skip_f32 = pl.pallas_call(
        functools.partial(_proj_kernel, F_pad=F_pad),
        out_shape=(jax.ShapeDtypeStruct((N_pad, F_pad), jnp.bfloat16),
                   jax.ShapeDtypeStruct((N_pad, F_pad), jnp.float32)),
        grid_spec=pltpu.PrefetchScalarGridSpec(
            num_scalar_prefetch=0,
            grid=(n_tiles,),
            in_specs=[
                pl.BlockSpec((tile, F_in), lambda i: (i, 0)),            # x tile
                pl.BlockSpec((F_in, 2 * F_pad), lambda i: (0, 0)),       # weights
            ],
            out_specs=(
                pl.BlockSpec((tile, F_pad), lambda i: (i, 0)),           # proj
                pl.BlockSpec((tile, F_pad), lambda i: (i, 0)),           # skip
            ),
        ),
        compiler_params=pltpu.CompilerParams(
            dimension_semantics=("parallel",),
            vmem_limit_bytes=32 * 1024 * 1024,
        ),
    )(x_p, w_cat)

    # ---------------- Pass 2: scatter-add aggregation ----------------
    # NOTE: on v6e/v7x with large graphs, tile=256 (MXU-width edge tiles)
    # amortizes per-step overhead further; VMEM footprint stays small.
    out_pad = pl.pallas_call(
        functools.partial(_agg_kernel, tile=tile),
        out_shape=jax.ShapeDtypeStruct((N_pad, F_pad), jnp.float32),
        grid_spec=pltpu.PrefetchScalarGridSpec(
            num_scalar_prefetch=0,
            grid=(n_tiles, n_tiles),            # (row tiles, edge tiles)
            in_specs=[
                pl.BlockSpec((tile, F_pad), lambda i, k: (k, 0)),   # proj (edge tile)
                pl.BlockSpec((1, tile), lambda i, k: (0, k)),       # targets (edge tile)
                pl.BlockSpec((tile, F_pad), lambda i, k: (i, 0)),   # skip (row tile, resident)
                pl.BlockSpec((1, F_pad), lambda i, k: (0, 0)),      # bias, resident
            ],
            out_specs=pl.BlockSpec((tile, F_pad), lambda i, k: (i, 0)),
            scratch_shapes=[pltpu.VMEM((tile, F_pad), jnp.float32)],
        ),
        compiler_params=pltpu.CompilerParams(
            dimension_semantics=("parallel", "arbitrary"),
            vmem_limit_bytes=32 * 1024 * 1024,
        ),
    )(proj_bf16, trg, skip_f32, bias_pad)

    return out_pad[:N, :F_out]


def gat_reference(x, edge_index, wp_t, ws_t, bias, *,
                  num_heads, num_out_features):
    """Pure-JAX f32 reference of the original module's forward pass."""
    N = x.shape[0]
    HF = num_heads * num_out_features
    proj = x @ wp_t                                            # (N, HF)
    skip = x @ ws_t                                            # (N, HF)
    trg = edge_index[1]
    agg = jnp.zeros((N, HF), jnp.float32).at[trg].add(proj)    # scatter_add_
    out = agg + skip
    out = out.reshape(N, num_heads, num_out_features).mean(axis=1)
    return out + bias[None, :]


if __name__ == "__main__":
    # Small but grid-exercising shapes: N nodes, E=N edges, F_in -> (H, F_out).
    N, F_in, F_out, H = 256, 32, 16, 4
    E = N

    key = jax.random.PRNGKey(0)
    k_x, k_wp, k_ws, k_b, k_e = jax.random.split(key, 5)

    x = jax.random.normal(k_x, (N, F_in), dtype=jnp.float32)
    # linear_proj.weight: (H*F_out, F_in); we store/pass the transpose.
    wp_t = (jax.random.normal(k_wp, (H * F_out, F_in), dtype=jnp.float32) * 0.1).T
    # skip_proj.weight: (H*F_out, F_in); transpose likewise.
    ws_t = (jax.random.normal(k_ws, (H * F_out, F_in), dtype=jnp.float32) * 0.1).T
    # Module zero-inits the bias; use a small non-zero one to exercise the path.
    bias = jax.random.normal(k_b, (F_out,), dtype=jnp.float32) * 0.1
    # edge_index: (2, E) with valid node indices; row 1 = target nodes.
    edge_index = jax.random.randint(k_e, (2, E), 0, N, dtype=jnp.int32)

    out = gat_forward(x, edge_index, wp_t, ws_t, bias,
                      num_heads=H, num_out_features=F_out, tile=128)
    out = jax.block_until_ready(out)

    ref = gat_reference(x, edge_index, wp_t, ws_t, bias,
                        num_heads=H, num_out_features=F_out)
    assert out.shape == (N, F_out)
    # Only approximation vs the f32 module: bf16 rounding of the (head-mean
    # folded) projections before f32-accumulated aggregation on the MXU.
    assert jnp.allclose(out, ref, atol=5e-2, rtol=5e-2), (
        "mismatch vs reference, max abs err = "
        f"{float(jnp.max(jnp.abs(out - ref)))}")

    # TODO(synk): dropout is treated as identity (eval mode); scoring fns /
    # leakyReLU / neighborhood softmax are dead code in this NAT variant.
    print("KERNEL_OK")
</pallas_src>

<mosaic_0001>
module attributes {stable_mosaic.version = 11 : i64} {
  func.func @_proj_kernel(%arg0: i32, %arg1: memref<128x32xf32, #tpu.memory_space<vmem>>, %arg2: memref<32x256xf32, #tpu.memory_space<vmem>>, %arg3: memref<128x128xbf16, #tpu.memory_space<vmem>>, %arg4: memref<128x128xf32, #tpu.memory_space<vmem>>) attributes {dimension_semantics = [#tpu.dimension_semantics<parallel>], iteration_bounds = array<i64: 2>, scalar_prefetch = 0 : i64, scratch_operands = 0 : i64, tpu.core_type = #tpu.core_type<tc>, window_params = [{transform_indices = @transform_0, window_bounds = array<i64: 128, 32>}, {pipeline_mode = #tpu.pipeline_mode<synchronous>, transform_indices = @transform_1, window_bounds = array<i64: 32, 256>}, {transform_indices = @transform_2, window_bounds = array<i64: 128, 128>}, {transform_indices = @transform_3, window_bounds = array<i64: 128, 128>}]} {
    %c0 = arith.constant 0 : index
    %c0_0 = arith.constant 0 : index
    %0 = vector.load %arg1[%c0, %c0_0] : memref<128x32xf32, #tpu.memory_space<vmem>>, vector<128x32xf32>
    %c0_1 = arith.constant 0 : index
    %c0_2 = arith.constant 0 : index
    %1 = vector.load %arg2[%c0_1, %c0_2] : memref<32x256xf32, #tpu.memory_space<vmem>>, vector<32x256xf32>
    %cst = arith.constant dense<0.000000e+00> : vector<128x256xf32>
    %2 = tpu.matmul %0, %1, %cst {dimension_numbers = #tpu.dot_dimension_numbers<[1], [0], [0], [1], [0, 0, 1, 1], [], []>} : vector<128x32xf32>, vector<32x256xf32>, vector<128x256xf32> -> vector<128x256xf32>
    %3 = vector.extract_strided_slice %2 {offsets = [0, 0], sizes = [128, 128], strides = [1, 1]} : vector<128x256xf32> to vector<128x128xf32>
    %4 = arith.truncf %3 : vector<128x128xf32> to vector<128x128xbf16>
    %c0_3 = arith.constant 0 : index
    %c0_4 = arith.constant 0 : index
    %5 = vector.load %arg3[%c0_3, %c0_4] : memref<128x128xbf16, #tpu.memory_space<vmem>>, vector<128x128xbf16>
    tpu.vector_store %arg3[%c0_3, %c0_4], %4 {strides = array<i32>} : memref<128x128xbf16, #tpu.memory_space<vmem>>, vector<128x128xbf16>,
    %6 = vector.extract_strided_slice %2 {offsets = [0, 128], sizes = [128, 128], strides = [1, 1]} : vector<128x256xf32> to vector<128x128xf32>
    %c0_5 = arith.constant 0 : index
    %c0_6 = arith.constant 0 : index
    %7 = vector.load %arg4[%c0_5, %c0_6] : memref<128x128xf32, #tpu.memory_space<vmem>>, vector<128x128xf32>
    tpu.vector_store %arg4[%c0_5, %c0_6], %6 {strides = array<i32>} : memref<128x128xf32, #tpu.memory_space<vmem>>, vector<128x128xf32>,
    return
  }
  func.func @transform_0(%arg0: i32) -> (i32, i32) {
    %c0_i32 = arith.constant 0 : i32
    %c0_i32_0 = arith.constant 0 : i32
    return %arg0, %c0_i32 : i32, i32
  }
  func.func @transform_1(%arg0: i32) -> (i32, i32) {
    %c0_i32 = arith.constant 0 : i32
    %c0_i32_0 = arith.constant 0 : i32
    %c0_i32_1 = arith.constant 0 : i32
    return %c0_i32, %c0_i32_0 : i32, i32
  }
  func.func @transform_2(%arg0: i32) -> (i32, i32) {
    %c0_i32 = arith.constant 0 : i32
    %c0_i32_0 = arith.constant 0 : i32
    return %arg0, %c0_i32 : i32, i32
  }
  func.func @transform_3(%arg0: i32) -> (i32, i32) {
    %c0_i32 = arith.constant 0 : i32
    %c0_i32_0 = arith.constant 0 : i32
    return %arg0, %c0_i32 : i32, i32
  }
}

</mosaic_0001>

<bundles_post_ra>
// kernel: tpu_custom_call.1
= control target key start
LH: loop header
LB: loop body
LE: loop exit
PB: predicated region body
PF: predicated region fallthrough
CT: control target
= control target key end

     0   :  { %9 = vsyncpa [#allocation3], 0  ;;  %s1166_s0 = inlined_call_operand.vmem [shape: f32[256,32], index: 0, kind: input, shape index: {}]   ;;  %s1167_s1 = inlined_call_operand.vmem [shape: f32[32,256], index: 1, kind: input, shape index: {}]   ;;  %s1168_s2 = inlined_call_operand.hbm [shape: bf16[256,128], index: 2, kind: output, shape index: {0}]   ;;  %s1169_s3 = inlined_call_operand.hbm [shape: f32[256,128], index: 3, kind: output, shape index: {1}]  }
   0x1   :  { %11 = vsyncpa [#allocation3 + $0x1], 0 }
   0x2   :  { %12 = vsyncpa [#allocation5], 0 }
   0x3   :  { %14 = vsyncpa [#allocation5 + $0x1], 0  ;;  %s940_s12 = smov 0   ;;  %s942_s13 = smov 0  }
   0x4   :  { %s944_s14 = smov 0   ;;  %s946_s15 = smov 0  }
   0x5 LB: > { %s961_s16 = sadd.s32 4294967295, %s911_s15   ;;  %s643_s17 = sadd.s32 4294967294, %s911_s15   ;;  %s911_s15 = sphi %s946_s15, %s1175_s15   ;;  %s907_s14 = sphi %s944_s14, %s1174_s14   ;;  %s903_s13 = sphi %s942_s13, %s1173_s13   ;;  %s899_s12 = sphi %s940_s12, %s1172_s12  }
   0x6   : > { %s965_s18 = sadd.s32 1, %s911_s15   ;;  %s74_s19 = sadd.s32 1, %s907_s14 }
   0x7   : > { %s71_s20 = ssub.s32 %s911_s15, %s965_s18  ;;  %p84_p0 = scmp.ne.s32.totalorder %s907_s14, %s903_s13 }
   0x8   : > { %p72_p1 = scmp.eq.s32.totalorder %s71_s20, 0  ;;  %p85_p2 = scmp.eq.s32.totalorder %s961_s16, 1 }
   0x9   : > { %p90_p3 = scmp.ne.s32.totalorder %s903_s13, %s899_s12  ;;  %p91_p4 = scmp.eq.s32.totalorder %s643_s17, 1 }
   0xa   : > { %s976_s21 = scalar_select %p72_p1, %s907_s14, %s74_s19  }
   0xb   : > { %p978_p5 = por %p85_p2, %p84_p0  ;;  %p982_p6 = por %p91_p4, %p90_p3 }
   0xc   : > { %p646_p7 = scmp.ge.s32.totalorder %s911_s15, 1  ;;  %p147_p8 = scmp.lt.s32.totalorder %s911_s15, 3 }
   0xe   : > { %p148_p9 = pnand %p646_p7, %p147_p8 }
   0xf   : > { %v201_v0 = vld [vmem:[%s1167_s1 + $0x8] sm:$0xff] (!%p148_p9)  ;;  %v203_v1 = vld [vmem:[%s1167_s1 + $0x18] sm:$0xff] (!%p148_p9)  ;;  %v200_v2 = vld [vmem:[%s1167_s1] sm:$0xff] (!%p148_p9)  ;;  %s649_s30 = sshll.u32 (!%p148_p9), %s961_s16, 4  ;;  %v913_v7 = vmov (!%p148_p9), 0.0   ;;  %vm208_vm0 = vcmask (!%p148_p9), 261120  }
  0x10   : > { %151 = sbr.rel (%p148_p9) target bundleno = 309 (0x135), region = 28  ;;  %v756_v3 = vpack.c.bf16 (!%p148_p9), %v203_v1, %v201_v0  ;;  %v202_v4 = vld [vmem:[%s1167_s1 + $0x10] sm:$0xff] (!%p148_p9)  ;;  %v205_v5 = vld [vmem:[%s1167_s1 + $0x28] sm:$0xff] (!%p148_p9)  ;;  %v207_v6 = vld [vmem:[%s1167_s1 + $0x38] sm:$0xff] (!%p148_p9)  ;;  %321 = vmatprep.mubr.f32.mxu0 (!%p148_p9), %v913_v7  ;;  %369 = vmatprep.mubr.f32.mxu1 (!%p148_p9), %v913_v7  ;;  %p177_p10 = scmp.lt.s32.totalorder (!%p148_p9), %s649_s30, 31 }
  0x11   : > { %v758_v8 = vpack.c.bf16 (!%p148_p9), %v202_v4, %v200_v2  ;;  %v760_v9 = vpack.c.bf16 (!%p148_p9), %v207_v6, %v205_v5  ;;  %v204_v10 = vld [vmem:[%s1167_s1 + $0x20] sm:$0xff] (!%p148_p9)  ;;  %v206_v11 = vld [vmem:[%s1167_s1 + $0x30] sm:$0xff] (!%p148_p9)  ;;  %s1051_s27 = sand.u32 (!%p148_p9), 1, %s903_s13   ;;  %s707_s5 = sshll.u32 (!%p148_p9), %s961_s16, 10 }
  0x12   : > { %757 = vmatprep.subr.bf16.mxu0 (!%p148_p9), %v756_v3  ;;  %764 = vmatprep.subr.bf16.mxu1 (!%p148_p9), %v756_v3  ;;  %v762_v12 = vpack.c.bf16 (!%p148_p9), %v206_v11, %v204_v10  ;;  %s648_s28 = sshll.u32 (!%p148_p9), %s1051_s27, 7  ;;  %s647_s29 = sshll.u32 (!%p148_p9), %s1051_s27, 6 }
  0x13   : > { %759 = vmatpush1.bf16.msra.mxu0 (!%p148_p9), %v758_v8  ;;  %766 = vmatpush1.bf16.msra.mxu1 (!%p148_p9), %v758_v8  ;;  %s1061_s4 = scalar_lea.vmem (!%p148_p9), [#allocation2], %s647_s29  ;;  %s708_s7 = sshll.u32 (!%p148_p9), %s961_s16, 11 }
  0x14   : > { %761 = vmatprep.subr.bf16.mxu0 (!%p148_p9), %v760_v9  ;;  %765 = vmatprep.subr.bf16.mxu1 (!%p148_p9), %v760_v9  ;;  %s533_s6 = sshll.u32 (!%p148_p9), %s1061_s4, 4  ;;  %s1086_s11 = scalar_lea.hbm (!%p148_p9), %s1168_s2, %s707_s5  ;;  %s1088_s6 = int_to_ptr.vmem [resolvable:$true] %s533_s6 }
  0x15   : > { %s1093_s16 = scalar_lea.hbm (!%p148_p9), %s1169_s3, %s708_s7  ;;  %s914_s25 = smov (!%p148_p9), [#allocation4]  }
  0x17   : > { %s1177_s30 = smov (!%p177_p10, %s649_s30), 31  ;;  %763 = vmatpush1.bf16.msra.mxu0 %v762_v12  ;;  %767 = vmatpush1.bf16.msra.mxu1 %v762_v12 }
  0x18   : > { %s650_s20 = sshll.u32 %s1177_s30, 3  ;;  %s1055_s30 = scalar_lea.vmem [#allocation4], %s648_s28 }
  0x19   : > { %s1016_s26 = scalar_lea.vmem %s1166_s0, %s650_s20  ;;  %s549_s8 = sshll.u32 %s1055_s30, 4  ;;  %s1095_s8 = int_to_ptr.vmem [resolvable:$true] %s549_s8 }
  0x1a   : > { %v184_v13 = vld [vmem:[%s1016_s26] sm:$0xff]  ;;  %v185_v15 = vld [vmem:[%s1016_s26 + $0x8] sm:$0xff]  ;;  %v186_v17 = vld [vmem:[%s1016_s26 + $0x10] sm:$0xff]  ;;  %s520_s20 = scalar_lea.sflag [#allocation5], %s1051_s27  ;;  %s817_s24 = scalar_lea.vmem %s1095_s8, 2048 }
  0x1b   : > { %v192_v14 = vld [vmem:[%s1016_s26 + $0x40] sm:$0xff]  ;;  %651 = vmatmul.mubr.msk.f32.vlgmr.msra.gmra.mrb[0].mxu0 %vm208_vm0, %v184_v13  ;;  %v193_v16 = vld [vmem:[%s1016_s26 + $0x48] sm:$0xff]  ;;  %v194_v18 = vld [vmem:[%s1016_s26 + $0x50] sm:$0xff]  ;;  %p818_p11 = scmp.ne.s32.totalorder %s1095_s8, %s817_s24 }
  0x1c   : > { %659 = vmatmul.mubr.msk.f32.vlgmr.msra.gmra.mrb[0].mxu1 %vm208_vm0, %v192_v14  ;;  %327 = vmatprep.mubr.f32.mxu0 %v913_v7  ;;  %v187_v19 = vld [vmem:[%s1016_s26 + $0x18] sm:$0xff]  ;;  %v188_v21 = vld [vmem:[%s1016_s26 + $0x20] sm:$0xff]  ;;  %v189_v23 = vld [vmem:[%s1016_s26 + $0x28] sm:$0xff] }
  0x1d   : > { %375 = vmatprep.mubr.f32.mxu1 %v913_v7  ;;  %v195_v20 = vld [vmem:[%s1016_s26 + $0x58] sm:$0xff]  ;;  %v196_v22 = vld [vmem:[%s1016_s26 + $0x60] sm:$0xff]  ;;  %v197_v24 = vld [vmem:[%s1016_s26 + $0x68] sm:$0xff]  ;;  %p819_p12 = pnand %p818_p11, %p978_p5 }
  0x1e   : > { %v190_v25 = vld [vmem:[%s1016_s26 + $0x30] sm:$0xff]  ;;  %v191_v27 = vld [vmem:[%s1016_s26 + $0x38] sm:$0xff] }
  0x1f   : > { %652 = vmatmul.mubr.msk.f32.gmra.mrb[2].mxu0 %vm208_vm0, %v185_v15  ;;  %v198_v26 = vld [vmem:[%s1016_s26 + $0x70] sm:$0xff]  ;;  %v199_v28 = vld [vmem:[%s1016_s26 + $0x78] sm:$0xff]  ;;  %p820_p13 = pneg %p819_p12  ;;  %s821_s26 = sshll.u32 %s914_s25, 4  ;;  %s822_s26 = int_to_ptr.vmem [resolvable:$false] %s821_s26 }
  0x20   : > { %660 = vmatmul.mubr.msk.f32.gmra.mrb[2].mxu1 %vm208_vm0, %v193_v16  ;;  %333 = vmatprep.mubr.f32.mxu0 %v913_v7  ;;  %s823_s28 = scalar_lea.vmem %s822_s26, 4096  ;;  %p824_p0 = scmp.lt.s32.totalorder %s1095_s8, %s822_s26 }
  0x21   : > { %381 = vmatprep.mubr.f32.mxu1 %v913_v7  ;;  %p825_p1 = scmp.lt.s32.totalorder %s823_s28, %s817_s24 }
  0x23   : > { %653 = vmatmul.mubr.msk.f32.gmra.mrb[4].mxu0 %vm208_vm0, %v186_v17  ;;  %p826_p2 = por %p825_p1, %p824_p0 }
  0x24   : > { %661 = vmatmul.mubr.msk.f32.gmra.mrb[4].mxu1 %vm208_vm0, %v194_v18  ;;  %339 = vmatprep.mubr.f32.mxu0 %v913_v7 }
  0x25   : > { %387 = vmatprep.mubr.f32.mxu1 %v913_v7  ;;  %p827_p3 = pnand %p826_p2, %p820_p13 }
  0x27   : > { %654 = vmatmul.mubr.msk.f32.gmra.mrb[6].mxu0 %vm208_vm0, %v187_v19 }
  0x28   : > { %662 = vmatmul.mubr.msk.f32.gmra.mrb[6].mxu1 %vm208_vm0, %v195_v20  ;;  %345 = vmatprep.mubr.f32.mxu0 %v913_v7 }
  0x29   : > { %393 = vmatprep.mubr.f32.mxu1 %v913_v7 }
  0x2b   : > { %655 = vmatmul.mubr.msk.f32.gmra.mrb[8].mxu0 %vm208_vm0, %v188_v21 }
  0x2c   : > { %663 = vmatmul.mubr.msk.f32.gmra.mrb[8].mxu1 %vm208_vm0, %v196_v22  ;;  %351 = vmatprep.mubr.f32.mxu0 %v913_v7 }
  0x2d   : > { %399 = vmatprep.mubr.f32.mxu1 %v913_v7 }
  0x2f   : > { %656 = vmatmul.mubr.msk.f32.gmra.mrb[10].mxu0 %vm208_vm0, %v189_v23 }
  0x30   : > { %664 = vmatmul.mubr.msk.f32.gmra.mrb[10].mxu1 %vm208_vm0, %v197_v24  ;;  %357 = vmatprep.mubr.f32.mxu0 %v913_v7 }
  0x31   : > { %405 = vmatprep.mubr.f32.mxu1 %v913_v7 }
  0x33   : > { %657 = vmatmul.mubr.msk.f32.gmra.mrb[12].mxu0 %vm208_vm0, %v190_v25 }
  0x34   : > { %665 = vmatmul.mubr.msk.f32.gmra.mrb[12].mxu1 %vm208_vm0, %v198_v26  ;;  %363 = vmatprep.mubr.f32.mxu0 %v913_v7 }
  0x35   : > { %411 = vmatprep.mubr.f32.mxu1 %v913_v7 }
  0x37   : > { %658 = vmatmul.mubr.msk.f32.gmra.mrb[14].mxu0 %vm208_vm0, %v191_v27 }
  0x38   : > { %666 = vmatmul.mubr.msk.f32.gmra.mrb[14].mxu1 %vm208_vm0, %v199_v28 }
  0xee   : > { %v323_v29 = vpop.f32.mrb[0].mxu0 }
  0xef   : > { %v371_v30 = vpop.f32.mrb[0].mxu1  ;;  %v325_v31 = vpop.f32.mrb[1].mxu0 }
  0xf0   : > { %v373_v32 = vpop.f32.mrb[1].mxu1  ;;  %498 = vst [vmem:[%s1055_s30] sm:$0xff] %v325_v31 }
  0xf1   : > { %506 = vst [vmem:[%s1055_s30 + $0x40] sm:$0xff] %v373_v32 }
  0xf2   : > { %v329_v33 = vpop.f32.mrb[2].mxu0 }
  0xf3   : > { %v377_v34 = vpop.f32.mrb[2].mxu1  ;;  %v712_v35 = vpack.c.bf16 %v329_v33, %v323_v29  ;;  %v331_v37 = vpop.f32.mrb[3].mxu0 }
  0xf4   : > { %v732_v36 = vpack.c.bf16 %v377_v34, %v371_v30  ;;  %v379_v38 = vpop.f32.mrb[3].mxu1  ;;  %499 = vst [vmem:[%s1055_s30 + $0x8] sm:$0xff] %v331_v37 }
  0xf5   : > { %507 = vst [vmem:[%s1055_s30 + $0x48] sm:$0xff] %v379_v38  ;;  %713 = vst [vmem:[%s1061_s4] sm:$0xff] %v712_v35  }
  0xf6   : > { %752 = vst [vmem:[%s1061_s4 + $0x20] sm:$0xff] %v732_v36   ;;  %v335_v39 = vpop.f32.mrb[4].mxu0 }
  0xf7   : > { %v383_v40 = vpop.f32.mrb[4].mxu1  ;;  %v337_v41 = vpop.f32.mrb[5].mxu0 }
  0xf8   : > { %v385_v42 = vpop.f32.mrb[5].mxu1  ;;  %500 = vst [vmem:[%s1055_s30 + $0x10] sm:$0xff] %v337_v41 }
  0xf9   : > { %508 = vst [vmem:[%s1055_s30 + $0x50] sm:$0xff] %v385_v42 }
  0xfa   : > { %v341_v43 = vpop.f32.mrb[6].mxu0 }
  0xfb   : > { %v389_v44 = vpop.f32.mrb[6].mxu1  ;;  %v717_v45 = vpack.c.bf16 %v341_v43, %v335_v39  ;;  %v343_v47 = vpop.f32.mrb[7].mxu0 }
  0xfc   : > { %v737_v46 = vpack.c.bf16 %v389_v44, %v383_v40  ;;  %v391_v48 = vpop.f32.mrb[7].mxu1  ;;  %501 = vst [vmem:[%s1055_s30 + $0x18] sm:$0xff] %v343_v47 }
  0xfd   : > { %509 = vst [vmem:[%s1055_s30 + $0x58] sm:$0xff] %v391_v48  ;;  %749 = vst [vmem:[%s1061_s4 + $0x8] sm:$0xff] %v717_v45  }
  0xfe   : > { %753 = vst [vmem:[%s1061_s4 + $0x28] sm:$0xff] %v737_v46   ;;  %v347_v49 = vpop.f32.mrb[8].mxu0 }
  0xff   : > { %v395_v50 = vpop.f32.mrb[8].mxu1  ;;  %v349_v51 = vpop.f32.mrb[9].mxu0 }
 0x100   : > { %v397_v52 = vpop.f32.mrb[9].mxu1  ;;  %502 = vst [vmem:[%s1055_s30 + $0x20] sm:$0xff] %v349_v51 }
 0x101   : > { %510 = vst [vmem:[%s1055_s30 + $0x60] sm:$0xff] %v397_v52 }
 0x102   : > { %v353_v53 = vpop.f32.mrb[10].mxu0 }
 0x103   : > { %v401_v54 = vpop.f32.mrb[10].mxu1  ;;  %v722_v55 = vpack.c.bf16 %v353_v53, %v347_v49  ;;  %v355_v57 = vpop.f32.mrb[11].mxu0 }
 0x104   : > { %v742_v56 = vpack.c.bf16 %v401_v54, %v395_v50  ;;  %v403_v58 = vpop.f32.mrb[11].mxu1  ;;  %503 = vst [vmem:[%s1055_s30 + $0x28] sm:$0xff] %v355_v57 }
 0x105   : > { %511 = vst [vmem:[%s1055_s30 + $0x68] sm:$0xff] %v403_v58  ;;  %750 = vst [vmem:[%s1061_s4 + $0x10] sm:$0xff] %v722_v55  }
 0x106   : > { %754 = vst [vmem:[%s1061_s4 + $0x30] sm:$0xff] %v742_v56   ;;  %v359_v59 = vpop.f32.mrb[12].mxu0 }
 0x107   : > { %v407_v60 = vpop.f32.mrb[12].mxu1  ;;  %v361_v61 = vpop.f32.mrb[13].mxu0 }
 0x108   : > { %v409_v62 = vpop.f32.mrb[13].mxu1  ;;  %504 = vst [vmem:[%s1055_s30 + $0x30] sm:$0xff] %v361_v61 }
 0x109   : > { %512 = vst [vmem:[%s1055_s30 + $0x70] sm:$0xff] %v409_v62 }
 0x10a   : > { %v365_v63 = vpop.f32.mrb[14].mxu0 }
 0x10b   : > { %v413_v0 = vpop.f32.mrb[14].mxu1  ;;  %v727_v1 = vpack.c.bf16 %v365_v63, %v359_v59  ;;  %v367_v3 = vpop.f32.mrb[15].mxu0 }
 0x10c   : > { %v747_v2 = vpack.c.bf16 %v413_v0, %v407_v60  ;;  %v415_v4 = vpop.f32.mrb[15].mxu1  ;;  %505 = vst [vmem:[%s1055_s30 + $0x38] sm:$0xff] %v367_v3 }
 0x10d   : > { %513 = vst [vmem:[%s1055_s30 + $0x78] sm:$0xff] %v415_v4  ;;  %751 = vst [vmem:[%s1061_s4 + $0x18] sm:$0xff] %v727_v1  }
 0x10e   : > { %755 = vst [vmem:[%s1061_s4 + $0x38] sm:$0xff] %v747_v2  }
 0x10f   : > { %830 = shalt.err (!%p827_p3)
}
 0x110   : > { %s831_s29 = scalar_lea.hbm %s1093_s16, 2048  ;;  %s835_s5 = scalar_lea.hbm %s1169_s3, 4096 }
 0x111   : > { %p832_p4 = scmp.ne.s32.totalorder %s1093_s16, %s831_s29  ;;  %p836_p9 = scmp.lt.u32.totalorder %s1093_s16, %s1169_s3 }
 0x112   : > { %p837_p10 = scmp.lt.u32.totalorder %s835_s5, %s831_s29  ;;  %p839_p12 = scmp.lt.u32.totalorder %s831_s29, %s1093_s16 }
 0x113   : > { %p833_p7 = pnand %p832_p4, %p978_p5 }
 0x114   : > { %p838_p11 = por %p837_p10, %p836_p9 }
 0x115   : > { %p834_p8 = pneg %p833_p7 }
 0x116   : > { %p840_p13 = por %p839_p12, %p838_p11 }
 0x118   : > { %p841_p0 = pnand %p840_p13, %p834_p8 }
 0x11a   : > { %844 = shalt.err (!%p841_p0)
}
 0x11b   : > { %s915_s10 = smov 128   ;;  %s916_s17 = smov 8  }
 0x11c   : > { %769 = dma.vmem_to_hbm [thread:$0]  (%p978_p5), %s1095_s8, 2048, %s1093_s16, %s520_s20, %s915_s10, %s915_s10, %s916_s17  }
 0x11d   : > { %s515_s19 = scalar_lea.sflag [#allocation3], %s1051_s27  ;;  %s845_s24 = scalar_lea.vmem %s1088_s6, 1024 }
 0x11e   : > { %p846_p1 = scmp.ne.s32.totalorder %s1088_s6, %s845_s24  ;;  %s917_s25 = smov [#allocation2]  }
 0x11f   : > { %s849_s26 = sshll.u32 %s917_s25, 4  ;;  %s850_s26 = int_to_ptr.vmem [resolvable:$false] %s849_s26 }
 0x120   : > { %p847_p2 = pnand %p846_p1, %p978_p5  ;;  %s851_s28 = scalar_lea.vmem %s850_s26, 2048 }
 0x121   : > { %p852_p4 = scmp.lt.s32.totalorder %s1088_s6, %s850_s26  ;;  %p853_p7 = scmp.lt.s32.totalorder %s851_s28, %s845_s24 }
 0x122   : > { %p848_p3 = pneg %p847_p2 }
 0x123   : > { %p854_p8 = por %p853_p7, %p852_p4 }
 0x125   : > { %p855_p9 = pnand %p854_p8, %p848_p3 }
 0x127   : > { %858 = shalt.err (!%p855_p9)
}
 0x128   : > { %s859_s8 = scalar_lea.hbm %s1086_s11, 1024  ;;  %s863_s29 = scalar_lea.hbm %s1168_s2, 2048 }
 0x129   : > { %p860_p10 = scmp.ne.s32.totalorder %s1086_s11, %s859_s8  ;;  %p864_p13 = scmp.lt.u32.totalorder %s1086_s11, %s1168_s2 }
 0x12a   : > { %p865_p0 = scmp.lt.u32.totalorder %s863_s29, %s859_s8  ;;  %p867_p2 = scmp.lt.u32.totalorder %s859_s8, %s1086_s11 }
 0x12b   : > { %p861_p11 = pnand %p860_p10, %p978_p5 }
 0x12c   : > { %p866_p1 = por %p865_p0, %p864_p13 }
 0x12d   : > { %p862_p12 = pneg %p861_p11 }
 0x12e   : > { %p868_p3 = por %p867_p2, %p866_p1 }
 0x130   : > { %p869_p4 = pnand %p868_p3, %p862_p12 }
 0x132   : > { %872 = shalt.err (!%p869_p4)
}
 0x133   : > { %s918_s5 = smov 64   ;;  %s919_s7 = smov 4  }
 0x134   : > { %768 = dma.vmem_to_hbm [thread:$0]  (%p978_p5), %s1088_s6, 1024, %s1086_s11, %s515_s19, %s918_s5, %s918_s5, %s919_s7  }
 0x135 PF: > { %p779_p7 = scmp.ge.s32.totalorder %s911_s15, 2  ;;  %s564_s9 = sand.u32 1, %s899_s12  }
 0x136   : > { %s565_s10 = scalar_lea.sflag [#allocation3], %s564_s9 }
 0x137   : > { %p773_p8 = pnand %p779_p7, %p982_p6 }
 0x139   : > { %890 = dma.done.wait (!%p773_p8), %s565_s10, 1024  }
 0x13a   : > { %892 = vsyncadd (!%p773_p8), %s565_s10, 4294966272  ;;  %s574_s17 = scalar_lea.sflag [#allocation5], %s564_s9 }
 0x13b   : > { %894 = dma.done.wait (!%p773_p8), %s574_s17, 2048  }
 0x13c   : > { %896 = vsyncadd (!%p773_p8), %s574_s17, 4294965248  ;;  %p17_p5 = scmp.ge.s32.totalorder %s965_s18, 4   ;;  %s1172_s12 = smov %s903_s13 }
 0x13d   : > { %s1173_s13 = smov %s907_s14  ;;  %s1174_s14 = smov %s976_s21 }
 0x13e   : > { %s1175_s15 = smov %s965_s18  ;;  %19 = sbr.rel (!%p17_p5) target bundleno = 5 (0x5), region = 80 }
 0x145   :  { %579 = vsyncpa [#allocation3], 1 }
 0x146   :  { %581 = vsyncpa [#allocation3 + $0x1], 1 }
 0x147   :  { %582 = vsyncpa [#allocation5], 1 }
 0x148   :  { %584 = vsyncpa [#allocation5 + $0x1], 1 }

</bundles_post_ra>
